<compile_context>
chip_gen: v7x
topology: tpu7x:2x2x1
jax: 0.10.0
libtpu: 0.0.40
codegen_flags: <defaults>
</compile_context>

<pallas_src>
import jax
import jax.numpy as jnp
from jax.experimental import pallas as pl
from jax.experimental.pallas import tpu as pltpu

LANES = 128


def _cubic_der_kernel(x_ref, o_ref):
    x = x_ref[...].astype(jnp.float32)
    r = jnp.maximum(x, 0.0)
    o_ref[...] = (0.5 * (r * r)).astype(o_ref.dtype)


def _cubic_der_jnp(x):
    r = jnp.maximum(x.astype(jnp.float32), 0.0)
    return (0.5 * (r * r)).astype(x.dtype)


def _tpu_cores_per_chip():
    """Best-effort TensorCore-per-chip count (v7x = 2, v5e/v6e = 1)."""
    try:
        info = pltpu.get_tpu_info()
        for attr in ("tensorcores_per_chip", "num_tensorcores", "num_cores",
                     "core_count"):
            v = getattr(info, attr, None)
            if isinstance(v, int) and v > 0:
                return v
    except Exception:
        pass
    try:
        kind = jax.devices()[0].device_kind.lower()
        if "v7" in kind:
            return 2
    except Exception:
        pass
    return 1


def cubic_der(x, *, target_block_bytes=4 << 20):
    """Elementwise 0.5 * relu(x)^2, matching CubicDer.forward."""
    orig_shape = x.shape
    orig_dtype = x.dtype
    itemsize = jnp.dtype(orig_dtype).itemsize
    # Rows per native tile: 8 for 32-bit, 16 for 16-bit, 32 for 8-bit dtypes.
    sub = 8 * max(1, 4 // itemsize)

    flat = x.reshape(-1)
    n = flat.shape[0]
    n_main = (n // LANES) * LANES

    if n_main == 0:
        # Smaller than one vreg row: not worth a kernel launch.
        return _cubic_der_jnp(flat).reshape(orig_shape)

    # Widest lane-dense slab width that divides the aligned prefix.
    width = LANES
    for w in (1024, 512, 256):
        if n_main % w == 0:
            width = w
            break
    rows = n_main // width

    # Row tile: as large as possible within ~target_block_bytes.
    tr = (target_block_bytes // (width * itemsize) // sub) * sub
    tr = max(sub, tr)
    tr = min(tr, rows)

    # TensorCore-aware split: only multi-TC chips (v7x) benefit, and each
    # core wants >= 2 steps so its DMA pipeline stays double-buffered.
    cores = _tpu_cores_per_chip()
    if cores > 1:
        min_steps = 2 * cores
        big_enough = rows >= min_steps * sub and n_main * itemsize >= (512 << 10)
        if big_enough and pl.cdiv(rows, tr) < min_steps:
            tr = max(sub, (rows // min_steps // sub) * sub)

    grid = (pl.cdiv(rows, tr),)

    x_main = flat if n_main == n else flat[:n_main]
    x2d = x_main.reshape(rows, width)

    cost = pl.CostEstimate(
        flops=3 * n_main,                      # max + 2 muls per element
        transcendentals=0,
        bytes_accessed=2 * n_main * itemsize,  # 1x read + 1x write
    )

    out2d = pl.pallas_call(
        _cubic_der_kernel,
        out_shape=jax.ShapeDtypeStruct((rows, width), orig_dtype),
        grid=grid,
        in_specs=[pl.BlockSpec((tr, width), lambda i: (i, 0))],
        out_specs=pl.BlockSpec((tr, width), lambda i: (i, 0)),
        compiler_params=pltpu.CompilerParams(
            dimension_semantics=("parallel",),
            vmem_limit_bytes=32 << 20,
        ),
        cost_estimate=cost,
    )(x2d)

    out_flat = out2d.reshape(-1)
    if n_main < n:
        # Ragged tail (< 128 elements): plain jnp, no pad / extra HBM pass.
        out_flat = jnp.concatenate([out_flat, _cubic_der_jnp(flat[n_main:])])
    return out_flat.reshape(orig_shape)


def cubic_der_ref(x):
    r = jnp.maximum(x, 0.0)
    return 0.5 * r * r


if __name__ == "__main__":
    key = jax.random.PRNGKey(0)
    # NCHW-like activation tensor: batch=2, channels=4, spatial=16x16.
    x = jax.random.normal(key, (2, 4, 16, 16), dtype=jnp.float32)

    out = jax.block_until_ready(cubic_der(x))
    ref = cubic_der_ref(x)
    assert out.shape == x.shape
    assert out.dtype == x.dtype
    assert jnp.allclose(out, ref, atol=1e-6, rtol=1e-6)

    # Ragged shape exercises the aligned-prefix + jnp-tail path (no padding).
    x2 = jax.random.normal(jax.random.PRNGKey(1), (2, 150), dtype=jnp.float32)
    out2 = jax.block_until_ready(cubic_der(x2))
    assert jnp.allclose(out2, cubic_der_ref(x2), atol=1e-6, rtol=1e-6)

    print("KERNEL_OK")
</pallas_src>

<mosaic_0001>
module attributes {stable_mosaic.version = 11 : i64} {
  func.func @_cubic_der_kernel(%arg0: i32, %arg1: memref<2x1024xf32, #tpu.memory_space<vmem>>, %arg2: memref<2x1024xf32, #tpu.memory_space<vmem>>) attributes {dimension_semantics = [#tpu.dimension_semantics<parallel>], iteration_bounds = array<i64: 1>, scalar_prefetch = 0 : i64, scratch_operands = 0 : i64, tpu.core_type = #tpu.core_type<tc>, window_params = [{transform_indices = @transform_0, window_bounds = array<i64: 2, 1024>}, {transform_indices = @transform_1, window_bounds = array<i64: 2, 1024>}]} {
    %c0 = arith.constant 0 : index
    %c0_0 = arith.constant 0 : index
    %0 = vector.load %arg1[%c0, %c0_0] : memref<2x1024xf32, #tpu.memory_space<vmem>>, vector<2x1024xf32>
    %cst = arith.constant 0.000000e+00 : f32
    %1 = vector.broadcast %cst : f32 to vector<2x1024xf32>
    %2 = arith.maximumf %0, %1 : vector<2x1024xf32>
    %3 = arith.mulf %2, %2 : vector<2x1024xf32>
    %cst_1 = arith.constant 5.000000e-01 : f32
    %4 = vector.broadcast %cst_1 : f32 to vector<2x1024xf32>
    %5 = arith.mulf %4, %3 : vector<2x1024xf32>
    %c0_2 = arith.constant 0 : index
    %c0_3 = arith.constant 0 : index
    %6 = vector.load %arg2[%c0_2, %c0_3] : memref<2x1024xf32, #tpu.memory_space<vmem>>, vector<2x1024xf32>
    tpu.vector_store %arg2[%c0_2, %c0_3], %5 {strides = array<i32>} : memref<2x1024xf32, #tpu.memory_space<vmem>>, vector<2x1024xf32>,
    return
  }
  func.func @transform_0(%arg0: i32) -> (i32, i32) {
    %c0_i32 = arith.constant 0 : i32
    %c0_i32_0 = arith.constant 0 : i32
    return %arg0, %c0_i32 : i32, i32
  }
  func.func @transform_1(%arg0: i32) -> (i32, i32) {
    %c0_i32 = arith.constant 0 : i32
    %c0_i32_0 = arith.constant 0 : i32
    return %arg0, %c0_i32 : i32, i32
  }
}

</mosaic_0001>

<bundles_post_ra>
// kernel: tpu_custom_call.1
= control target key start
LH: loop header
LB: loop body
LE: loop exit
PB: predicated region body
PF: predicated region fallthrough
CT: control target
= control target key end

     0   :  { %6 = vsyncpa [#allocation3], 0  ;;  %s132_s0 = inlined_call_operand.hbm [shape: f32[2,1024], index: 0, kind: input, shape index: {}]   ;;  %s133_s1 = inlined_call_operand.hbm [shape: f32[2,1024], index: 1, kind: output, shape index: {}]  }
   0x1   :  { %7 = vsyncpa [#allocation4], 0  ;;  %s96_s6 = smov [#allocation2]   ;;  %s48_s10 = scalar_lea.hbm %s132_s0, 256 }
   0x2   :  { %s14_s7 = sshll.u32 %s96_s6, 4  ;;  %p49_p0 = scmp.ne.s32.totalorder %s132_s0, %s48_s10  ;;  %s15_s7 = int_to_ptr.vmem [resolvable:$true] %s14_s7 }
   0x3   :  { %p52_p1 = scmp.lt.u32.totalorder %s48_s10, %s132_s0 }
   0x5   :  { %p54_p2 = pnand %p52_p1, %p49_p0 }
   0x7   :  { %57 = shalt.err (!%p54_p2)
}
   0x8   :  { %s58_s15 = scalar_lea.vmem %s15_s7, 256  ;;  %p63_p4 = scmp.lt.s32.totalorder %s15_s7, %s15_s7 }
   0x9   :  { %p59_p3 = scmp.ne.s32.totalorder %s15_s7, %s58_s15  ;;  %p64_p5 = scmp.lt.s32.totalorder %s58_s15, %s58_s15 }
   0xb   :  { %p65_p6 = por %p64_p5, %p63_p4 }
   0xd   :  { %p66_p7 = pnand %p65_p6, %p59_p3 }
   0xf   :  { %69 = shalt.err (!%p66_p7)
}
  0x10   :  { %17 = dma.hbm_to_vmem [thread:$0]  %s132_s0, 256, %s15_s7, [#allocation3]  }
  0x11   :  { %92 = dma.done.wait [#allocation3], 256  }
  0x12   :  { %93 = vsyncadd [#allocation3], 4294967040  ;;  %v21_v0 = vld [vmem:[#allocation2] sm:$0xff]  ;;  %v22_v1 = vld [vmem:[#allocation2 + $0x8] sm:$0xff]  ;;  %s97_s18 = smov [#allocation5]  }
  0x13   :  { %v23_v2 = vmax.f32 %v21_v0, 0.0  ;;  %v24_v3 = vmax.f32 %v22_v1, 0.0  ;;  %s37_s19 = sshll.u32 %s97_s18, 4  ;;  %s38_s19 = int_to_ptr.vmem [resolvable:$true] %s37_s19 }
  0x14   :  { %s70_s20 = scalar_lea.vmem %s38_s19, 256  ;;  %p75_p9 = scmp.lt.s32.totalorder %s38_s19, %s38_s19 }
  0x15   :  { %v25_v4 = vmul.f32 %v23_v2, %v23_v2  ;;  %v26_v5 = vmul.f32 %v24_v3, %v24_v3  ;;  %p71_p8 = scmp.ne.s32.totalorder %s38_s19, %s70_s20  ;;  %p76_p10 = scmp.lt.s32.totalorder %s70_s20, %s70_s20 }
  0x17   :  { %v27_v6 = vmul.f32 0.5, %v25_v4  ;;  %v28_v7 = vmul.f32 0.5, %v26_v5  ;;  %p77_p11 = por %p76_p10, %p75_p9 }
  0x19   :  { %29 = vst [vmem:[#allocation5] sm:$0xff] %v27_v6  ;;  %30 = vst [vmem:[#allocation5 + $0x8] sm:$0xff] %v28_v7  ;;  %p78_p12 = pnand %p77_p11, %p71_p8 }
  0x1b   :  { %81 = shalt.err (!%p78_p12)
}
  0x1c   :  { %s82_s22 = scalar_lea.hbm %s133_s1, 256 }
  0x1d   :  { %p83_p13 = scmp.ne.s32.totalorder %s133_s1, %s82_s22  ;;  %p86_p0 = scmp.lt.u32.totalorder %s82_s22, %s133_s1 }
  0x1f   :  { %p88_p1 = pnand %p86_p0, %p83_p13 }
  0x21   :  { %91 = shalt.err (!%p88_p1)
}
  0x22   :  { %40 = dma.vmem_to_hbm [thread:$0]  %s38_s19, 256, %s133_s1, [#allocation4]  }
  0x23   :  { %94 = dma.done.wait [#allocation4], 256  }
  0x24   :  { %95 = vsyncadd [#allocation4], 4294967040 }
  0x25   :  { %44 = vsyncpa [#allocation3], 1 }
  0x26   :  { %45 = vsyncpa [#allocation4], 1 }

</bundles_post_ra>
